<compile_context>
chip_gen: v7x
topology: tpu7x:2x2x1
jax: 0.10.0
libtpu: 0.0.40
codegen_flags: <defaults>
</compile_context>

<pallas_src>
import functools

import jax
import jax.numpy as jnp
from jax.experimental import pallas as pl
from jax.experimental.pallas import tpu as pltpu


def _label_smoothing_loss_kernel(logits_ref, tgt_ref, wtgt_ref, w_ref, out_ref,
                                 *, confidence, smoothing, padding_idx,
                                 block_rows, total_rows):
    x = logits_ref[...].astype(jnp.float32)           # (TB, V) native dtype -> f32
    tgt = tgt_ref[...]                                 # (TB, 1) int32
    w_tgt = wtgt_ref[...]                              # (TB, 1) f32 = weight[target]
    w = w_ref[...].astype(jnp.float32)                 # (1, V)

    # Numerically stable log-sum-exp along the vocab (lane) axis.
    m = jnp.max(x, axis=-1, keepdims=True)                                 # (TB,1)
    lse = m + jnp.log(jnp.sum(jnp.exp(x - m), axis=-1, keepdims=True))     # (TB,1)

    # Algebraic fold -- no (TB, V) model_prob / nlogp / t materialized:
    #   sum_v w[v] * (lse - x[b,v]) = lse * sum(w) - sum_v w[v] * x[b,v]
    w_sum = jnp.sum(w, axis=-1, keepdims=True)                             # (1,1)
    xw = jnp.sum(x * w, axis=-1, keepdims=True)                            # (TB,1)
    t_sum = lse * w_sum - xw

    # t at the target column: weight[tgt] * (lse - x[b, tgt]); single select-reduce.
    col = jax.lax.broadcasted_iota(jnp.int32, x.shape, 1)
    x_tgt = jnp.sum(jnp.where(col == tgt, x, 0.0), axis=-1, keepdims=True)
    t_tgt = w_tgt * (lse - x_tgt)

    per_row = smoothing * t_sum + (confidence - smoothing) * t_tgt         # (TB,1)

    if padding_idx == 0:
        # Original quirk: `if not ignore_index: one_hot[padding_idx] = 0`
        # (only triggers for ignore_index == 0). Static column slice, no
        # second iota/select pass. Rows with tgt == 0 are zeroed below anyway.
        t_pad = w[0:1, 0:1] * (lse - x[:, 0:1])
        per_row = per_row - smoothing * t_pad

    # Mask ragged batch-tail rows (no wrapper pad, so the boundary block holds
    # unspecified data) and ignored rows. MUST remain a SELECT applied before
    # the sum so NaN/Inf from garbage rows cannot leak.
    row = (pl.program_id(0) * block_rows
           + jax.lax.broadcasted_iota(jnp.int32, per_row.shape, 0))
    valid = row < total_rows
    if padding_idx >= 0:
        valid = jnp.logical_and(valid, tgt != padding_idx)
    per_row = jnp.where(valid, per_row, 0.0)

    # Full (8,128) lane/sublane-dense partial-sum writeback (unmasked store).
    out_ref[...] = jnp.full(out_ref.shape, jnp.sum(per_row), dtype=jnp.float32)


def label_smoothing_loss(output, target, weight, *, label_smoothing,
                         padding_idx=-1, size_average=True):
    """output: (B, V) float, target: (B,) int, weight: (V,) float -> scalar."""
    B, V = output.shape
    smoothing_value = float(label_smoothing) / (V - 1)
    confidence = 1.0 - float(label_smoothing)

    itemsize = jnp.dtype(output.dtype).itemsize
    # dtype-native sublane tile: 8 (f32), 16 (bf16), 32 (int8/fp8).
    sublane = max(8, 32 // max(1, itemsize))

    # Per-generation VMEM: v5e/v6e have 128 MiB physical, v7x only 64 MiB.
    try:
        vmem_phys = int(pltpu.get_tpu_info().vmem_capacity_bytes)
    except Exception:
        vmem_phys = 64 * 1024 * 1024          # conservative fallback (v7x-safe)
    if vmem_phys <= 96 * 1024 * 1024:
        vmem_limit = 48 * 1024 * 1024         # v7x-class
    else:
        vmem_limit = 64 * 1024 * 1024         # v5e / v6e

    # Working-set-aware batch tile: double-buffered native input block plus
    # ~4 simultaneously-live f32 (TB, V) temps; weight row stays resident.
    w_resident = 2 * ((V + 127) // 128) * 4096
    budget = (vmem_limit * 3) // 4 - w_resident
    bytes_per_row = V * (2 * itemsize + 16)
    tb = budget // bytes_per_row
    tb = min(tb, ((B + sublane - 1) // sublane) * sublane)   # not bigger than batch
    if B > sublane:
        # Keep >= 2 grid steps: v7x megacore shards the "parallel" batch axis
        # and the DMA pipeline gets something to overlap on every generation.
        half = ((-(-B // 2)) + sublane - 1) // sublane * sublane
        tb = min(tb, half)
    tb = (tb // sublane) * sublane
    if tb < sublane:
        # TODO(synk): add a vocab-axis grid dimension (online-softmax running
        # max/denominator) so very large vocabularies fit the VMEM budget.
        raise ValueError(
            f"vocab_size={V} too large for a vocab-resident block: minimum "
            f"block needs ~{sublane * bytes_per_row} bytes, budget {budget}.")
    num_blocks = -(-B // tb)

    tgt2 = target.astype(jnp.int32).reshape(B, 1)
    w_tgt = jnp.take(weight, target.astype(jnp.int32), axis=0)
    w_tgt = w_tgt.astype(jnp.float32).reshape(B, 1)
    w2 = weight.reshape(1, V)

    kernel = functools.partial(
        _label_smoothing_loss_kernel,
        confidence=confidence,
        smoothing=smoothing_value,
        padding_idx=int(padding_idx),
        block_rows=tb,
        total_rows=B,
    )

    partials = pl.pallas_call(
        kernel,
        out_shape=jax.ShapeDtypeStruct((num_blocks, 8, 128), jnp.float32),
        grid=(num_blocks,),
        in_specs=[
            pl.BlockSpec((tb, V), lambda i: (i, 0)),   # logits block (native dtype)
            pl.BlockSpec((tb, 1), lambda i: (i, 0)),   # targets block
            pl.BlockSpec((tb, 1), lambda i: (i, 0)),   # weight[target] block
            pl.BlockSpec((1, V), lambda i: (0, 0)),    # weight row (resident)
        ],
        out_specs=pl.BlockSpec((1, 8, 128), lambda i: (i, 0, 0)),
        compiler_params=pltpu.CompilerParams(
            dimension_semantics=("parallel",),
            vmem_limit_bytes=vmem_limit,
        ),
    )(output, tgt2, w_tgt, w2)

    total = jnp.sum(partials[:, 0, 0])
    if size_average:
        total = total / jnp.float32(B)
    return total


def _reference(output, target, weight, *, label_smoothing, padding_idx=-1,
               size_average=True):
    """Pure-JAX reference mirroring the PyTorch module."""
    B, V = output.shape
    smoothing_value = label_smoothing / (V - 1)
    confidence = 1.0 - label_smoothing
    model_prob = jnp.full((B, V), smoothing_value, dtype=jnp.float32)
    if padding_idx == 0:
        model_prob = model_prob.at[:, padding_idx].set(0.0)
    model_prob = model_prob.at[jnp.arange(B), target].set(confidence)
    if padding_idx >= 0:
        model_prob = jnp.where((target == padding_idx)[:, None], 0.0, model_prob)
    logp = jax.nn.log_softmax(output.astype(jnp.float32), axis=-1)
    tmp_weighted = weight[None, :].astype(jnp.float32) * (-logp * model_prob)
    loss = jnp.sum(tmp_weighted)
    return loss / B if size_average else loss


if __name__ == "__main__":
    key = jax.random.PRNGKey(0)
    k1, k2, k3 = jax.random.split(key, 3)

    B, V = 8, 128                   # batch_size x n_classes (vocab_size)
    label_smoothing = 0.1

    output = jax.random.normal(k1, (B, V), dtype=jnp.float32)
    target = jax.random.randint(k2, (B,), 0, V, dtype=jnp.int32)
    # CrossEntropyLoss per-class weight (module takes it in __init__);
    # deterministic synthetic init.
    weight = jax.random.uniform(k3, (V,), dtype=jnp.float32, minval=0.5,
                                maxval=1.5)

    loss = label_smoothing_loss(output, target, weight,
                                label_smoothing=label_smoothing,
                                padding_idx=-1, size_average=True)
    loss = jax.block_until_ready(loss)

    ref = _reference(output, target, weight, label_smoothing=label_smoothing,
                     padding_idx=-1, size_average=True)
    assert jnp.allclose(loss, ref, rtol=1e-5, atol=1e-4), (loss, ref)

    print("KERNEL_OK")
</pallas_src>

<mosaic_0001>
module attributes {stable_mosaic.version = 11 : i64} {
  func.func @_label_smoothing_loss_kernel(%arg0: i32, %arg1: memref<8x128xf32, #tpu.memory_space<vmem>>, %arg2: memref<8x1xi32, #tpu.memory_space<vmem>>, %arg3: memref<8x1xf32, #tpu.memory_space<vmem>>, %arg4: memref<1x128xf32, #tpu.memory_space<vmem>>, %arg5: memref<1x8x128xf32, #tpu.memory_space<vmem>>) attributes {dimension_semantics = [#tpu.dimension_semantics<parallel>], iteration_bounds = array<i64: 1>, scalar_prefetch = 0 : i64, scratch_operands = 0 : i64, tpu.core_type = #tpu.core_type<tc>, window_params = [{transform_indices = @transform_0, window_bounds = array<i64: 8, 128>}, {transform_indices = @transform_1, window_bounds = array<i64: 8, 1>}, {transform_indices = @transform_2, window_bounds = array<i64: 8, 1>}, {pipeline_mode = #tpu.pipeline_mode<synchronous>, transform_indices = @transform_3, window_bounds = array<i64: 1, 128>}, {transform_indices = @transform_4, window_bounds = array<i64: 1, 8, 128>}]} {
    %c0 = arith.constant 0 : index
    %c0_0 = arith.constant 0 : index
    %0 = vector.load %arg1[%c0, %c0_0] : memref<8x128xf32, #tpu.memory_space<vmem>>, vector<8x128xf32>
    %c0_1 = arith.constant 0 : index
    %c0_2 = arith.constant 0 : index
    %1 = vector.load %arg2[%c0_1, %c0_2] : memref<8x1xi32, #tpu.memory_space<vmem>>, vector<8x1xi32>
    %c0_3 = arith.constant 0 : index
    %c0_4 = arith.constant 0 : index
    %2 = vector.load %arg3[%c0_3, %c0_4] : memref<8x1xf32, #tpu.memory_space<vmem>>, vector<8x1xf32>
    %c0_5 = arith.constant 0 : index
    %c0_6 = arith.constant 0 : index
    %3 = vector.load %arg4[%c0_5, %c0_6] : memref<1x128xf32, #tpu.memory_space<vmem>>, vector<1x128xf32>
    %cst = arith.constant dense<0xFF800000> : vector<8xf32>
    %4 = vector.multi_reduction <maximumf>, %0, %cst [1] : vector<8x128xf32> to vector<8xf32>
    %5 = vector.shape_cast %4 : vector<8xf32> to vector<8x1xf32>
    %6 = vector.broadcast %5 : vector<8x1xf32> to vector<8x128xf32>
    %7 = arith.subf %0, %6 : vector<8x128xf32>
    %8 = math.exp %7 : vector<8x128xf32>
    %cst_7 = arith.constant dense<0.000000e+00> : vector<8xf32>
    %9 = vector.multi_reduction <add>, %8, %cst_7 [1] : vector<8x128xf32> to vector<8xf32>
    %10 = vector.shape_cast %9 : vector<8xf32> to vector<8x1xf32>
    %11 = math.log %10 : vector<8x1xf32>
    %12 = arith.addf %5, %11 : vector<8x1xf32>
    %cst_8 = arith.constant dense<0.000000e+00> : vector<1xf32>
    %13 = vector.multi_reduction <add>, %3, %cst_8 [1] : vector<1x128xf32> to vector<1xf32>
    %14 = vector.shape_cast %13 : vector<1xf32> to vector<1x1xf32>
    %15 = vector.broadcast %3 : vector<1x128xf32> to vector<8x128xf32>
    %16 = arith.mulf %0, %15 : vector<8x128xf32>
    %cst_9 = arith.constant dense<0.000000e+00> : vector<8xf32>
    %17 = vector.multi_reduction <add>, %16, %cst_9 [1] : vector<8x128xf32> to vector<8xf32>
    %18 = vector.shape_cast %17 : vector<8xf32> to vector<8x1xf32>
    %19 = vector.broadcast %14 : vector<1x1xf32> to vector<8x1xf32>
    %20 = arith.mulf %12, %19 : vector<8x1xf32>
    %21 = arith.subf %20, %18 : vector<8x1xf32>
    %22 = tpu.iota {dimensions = array<i32: 1>} : vector<8x128xi32>
    %23 = vector.broadcast %1 : vector<8x1xi32> to vector<8x128xi32>
    %24 = arith.cmpi eq, %22, %23 : vector<8x128xi32>
    %cst_10 = arith.constant 0.000000e+00 : f32
    %25 = vector.broadcast %cst_10 : f32 to vector<8x128xf32>
    %26 = arith.select %24, %0, %25 : vector<8x128xi1>, vector<8x128xf32>
    %cst_11 = arith.constant dense<0.000000e+00> : vector<8xf32>
    %27 = vector.multi_reduction <add>, %26, %cst_11 [1] : vector<8x128xf32> to vector<8xf32>
    %28 = vector.shape_cast %27 : vector<8xf32> to vector<8x1xf32>
    %29 = arith.subf %12, %28 : vector<8x1xf32>
    %30 = arith.mulf %2, %29 : vector<8x1xf32>
    %cst_12 = arith.constant 7.87401571E-4 : f32
    %31 = vector.broadcast %cst_12 : f32 to vector<8x1xf32>
    %32 = arith.mulf %31, %21 : vector<8x1xf32>
    %cst_13 = arith.constant 0.899212599 : f32
    %33 = vector.broadcast %cst_13 : f32 to vector<8x1xf32>
    %34 = arith.mulf %33, %30 : vector<8x1xf32>
    %35 = arith.addf %32, %34 : vector<8x1xf32>
    %c8_i32 = arith.constant 8 : i32
    %36 = arith.muli %arg0, %c8_i32 : i32
    %37 = tpu.iota {dimensions = array<i32: 0>} : vector<8x1xi32>
    %38 = vector.broadcast %36 : i32 to vector<8x1xi32>
    %39 = arith.addi %38, %37 : vector<8x1xi32>
    %c8_i32_14 = arith.constant 8 : i32
    %40 = vector.broadcast %c8_i32_14 : i32 to vector<8x1xi32>
    %41 = arith.cmpi slt, %39, %40 : vector<8x1xi32>
    %cst_15 = arith.constant 0.000000e+00 : f32
    %42 = vector.broadcast %cst_15 : f32 to vector<8x1xf32>
    %43 = arith.select %41, %35, %42 : vector<8x1xi1>, vector<8x1xf32>
    %44 = vector.shape_cast %43 : vector<8x1xf32> to vector<1x8x1xf32>
    %cst_16 = arith.constant dense<0.000000e+00> : vector<1xf32>
    %45 = vector.multi_reduction <add>, %44, %cst_16 [1, 2] : vector<1x8x1xf32> to vector<1xf32>
    %46 = vector.shape_cast %45 : vector<1xf32> to vector<1x1x1xf32>
    %47 = vector.extract %46[0, 0, 0] : f32 from vector<1x1x1xf32>
    %48 = vector.broadcast %47 : f32 to vector<1x8x128xf32>
    %c0_17 = arith.constant 0 : index
    %c0_18 = arith.constant 0 : index
    %c0_19 = arith.constant 0 : index
    %49 = vector.load %arg5[%c0_17, %c0_18, %c0_19] : memref<1x8x128xf32, #tpu.memory_space<vmem>>, vector<1x8x128xf32>
    tpu.vector_store %arg5[%c0_17, %c0_18, %c0_19], %48 {strides = array<i32>} : memref<1x8x128xf32, #tpu.memory_space<vmem>>, vector<1x8x128xf32>,
    return
  }
  func.func @transform_0(%arg0: i32) -> (i32, i32) {
    %c0_i32 = arith.constant 0 : i32
    %c0_i32_0 = arith.constant 0 : i32
    return %arg0, %c0_i32 : i32, i32
  }
  func.func @transform_1(%arg0: i32) -> (i32, i32) {
    %c0_i32 = arith.constant 0 : i32
    %c0_i32_0 = arith.constant 0 : i32
    return %arg0, %c0_i32 : i32, i32
  }
  func.func @transform_2(%arg0: i32) -> (i32, i32) {
    %c0_i32 = arith.constant 0 : i32
    %c0_i32_0 = arith.constant 0 : i32
    return %arg0, %c0_i32 : i32, i32
  }
  func.func @transform_3(%arg0: i32) -> (i32, i32) {
    %c0_i32 = arith.constant 0 : i32
    %c0_i32_0 = arith.constant 0 : i32
    %c0_i32_1 = arith.constant 0 : i32
    return %c0_i32, %c0_i32_0 : i32, i32
  }
  func.func @transform_4(%arg0: i32) -> (i32, i32, i32) {
    %c0_i32 = arith.constant 0 : i32
    %c0_i32_0 = arith.constant 0 : i32
    %c0_i32_1 = arith.constant 0 : i32
    return %arg0, %c0_i32, %c0_i32_0 : i32, i32, i32
  }
}

</mosaic_0001>

<bundles_post_ra>
// kernel: tpu_custom_call.1
= control target key start
LH: loop header
LB: loop body
LE: loop exit
PB: predicated region body
PF: predicated region fallthrough
CT: control target
= control target key end

     0   :  { %s183_s0 = inlined_call_operand.vmem [shape: f32[8,128], index: 0, kind: input, shape index: {}]   ;;  %s184_s1 = inlined_call_operand.vmem [shape: s32[8,1], index: 1, kind: input, shape index: {}]   ;;  %s185_s2 = inlined_call_operand.vmem [shape: f32[8,1], index: 2, kind: input, shape index: {}]   ;;  %s186_s3 = inlined_call_operand.vmem [shape: f32[1,128], index: 3, kind: input, shape index: {}]   ;;  %s187_s4 = inlined_call_operand.hbm [shape: f32[1,8,128], index: 4, kind: output, shape index: {}]  }
   0x1   :  { %v18_v0 = vld [vmem:[%s183_s0] sm:$0xff] }
   0x2   :  { %9 = vsyncpa [#allocation3], 0  ;;  %22 = vmax.xlane.f32.xlu0 %v18_v0  ;;  %v132_v1 = vmov 0   ;;  %v19_v2 = vld [vmem:[%s184_s1] sm:$0xff]  ;;  %v37_v6 = vlaneseq  ;;  %vm32_vm0 = vcmask 1040384   ;;  %vm72_vm2 = vcmask 7168  }
   0x3   :  { %103 = vset.pattern.permute.xlu0 %v132_v1  ;;  %v21_v8 = vld [vmem:[%s186_s3] sm:$0x1] }
   0x4   :  { %v38_v7 = vshrl.u32 %v37_v6, 7  ;;  %v52_v9 = vand.u32 127, %v37_v6  ;;  %v33_v13 = vsel %vm32_vm0, %v21_v8, 0.0  ;;  %v20_v24 = vld [vmem:[%s185_s2] sm:$0xff]  ;;  %s133_s2 = smov [#allocation2]  }
   0x5   :  { %s91_s3 = sshll.u32 %s133_s2, 4  ;;  %s92_s3 = int_to_ptr.vmem [resolvable:$true] %s91_s3 }
   0x6   :  { %v39_v12 = vsub.s32 0, %v38_v7  ;;  %s108_s22 = scalar_lea.vmem %s92_s3, 128  ;;  %p113_p1 = scmp.lt.s32.totalorder %s92_s3, %s92_s3 }
   0x7   :  { %p109_p0 = scmp.ne.s32.totalorder %s92_s3, %s108_s22  ;;  %p114_p2 = scmp.lt.s32.totalorder %s108_s22, %s108_s22 }
   0x8   :  { %v40_v14 = vrot.slane %v21_v8, %v39_v12 }
   0x9   :  { %p115_p3 = por %p114_p2, %p113_p1 }
   0xa   :  { %v42_v16 = vmul.f32 %v40_v14, %v18_v0 }
   0xb   :  { %p116_p4 = pnand %p115_p3, %p109_p0 }
  0x18   :  { %54 = vperm.xlu0 %103, %v19_v2  }
  0x8f   :  { %v23_v3 = vpop.xlane.xlu0 %22 }
  0x90   :  { %v24_v4 = vsub.f32 %v18_v0, %v23_v3 }
  0x92   :  { %v25_v5 = vmul.f32 1.442695, %v24_v4 }
  0x94   :  { %104 = vpow2.f32 %v25_v5 }
  0x97   :  { %v55_v11 = vpop.permute.xlu0 %54 }
  0x98   :  { %vm56_vm1 = vcmp.eq.s32.totalorder %v52_v9, %v55_v11 }
  0x99   :  { %v57_v15 = vsel %vm56_vm1, %v18_v0, 0.0 }
  0x9e   :  { %v105_v10 = vpop.eup %104 }
  0x9f   :  { %27 = vadd.xlane.f32.xlu1 %v105_v10 }
  0xa3   :  { %34 = vadd.xlane.f32.xlu1 %v33_v13 }
  0xa7   :  { %58 = vadd.xlane.f32.xlu1 %v57_v15 }
  0xab   :  { %43 = vadd.xlane.f32.xlu1 %v42_v16 }
 0x12c   :  { %v28_v17 = vpop.xlane.xlu1 %27 }
 0x12d   :  { %106 = vlog2.f32 %v28_v17 }
 0x130   :  { %v35_v18 = vpop.xlane.xlu1 %34 }
 0x131   :  { %v48_v22 = vrot.slane %v35_v18, %v39_v12 }
 0x134   :  { %v59_v19 = vpop.xlane.xlu1 %58 }
 0x137   :  { %v107_v20 = vpop.eup %106 }
 0x138   :  { %v30_v21 = vmul.f32 0.6931472, %v107_v20  ;;  %v44_v25 = vpop.xlane.xlu1 %43 }
 0x13a   :  { %v31_v23 = vadd.f32 %v30_v21, %v23_v3 }
 0x13c   :  { %v60_v26 = vsub.f32 %v31_v23, %v59_v19  ;;  %v49_v27 = vmul.f32 %v48_v22, %v31_v23 }
 0x13e   :  { %v61_v28 = vmul.f32 %v60_v26, %v20_v24  ;;  %v50_v29 = vsub.f32 %v49_v27, %v44_v25 }
 0x140   :  { %v63_v30 = vmul.f32 0.8992126, %v61_v28  ;;  %v62_v31 = vmul.f32 0.0007874016, %v50_v29 }
 0x142   :  { %v64_v32 = vadd.f32 %v63_v30, %v62_v31 }
 0x144   :  { %v73_v33 = vsel %vm72_vm2, %v64_v32, 0.0 }
 0x145   :  { %74 = vadd.xlane.f32.xlu1 %v73_v33 }
 0x1d2   :  { %v75_v34 = vpop.xlane.xlu1 %74 }
 0x1d3   :  { %v76_v35 = vrot.slane %v75_v34, 4 }
 0x1d5   :  { %v77_v36 = vadd.f32 %v76_v35, %v75_v34 }
 0x1d7   :  { %v78_v37 = vrot.slane %v77_v36, 2 }
 0x1d9   :  { %v79_v38 = vadd.f32 %v78_v37, %v77_v36 }
 0x1db   :  { %v80_v39 = vrot.slane %v79_v38, 1 }
 0x1dd   :  { %v81_v40 = vadd.f32 %v80_v39, %v79_v38 }
 0x1df   :  { %99 = vpush %v81_v40 }
 0x210   :  { %s100_s21 = spop %99 }
 0x211   :  { %v83_v41 = vstv %s100_s21 }
 0x212   :  { %84 = vst [vmem:[#allocation2] sm:$0xff] %v83_v41 }
 0x213   :  { %119 = shalt.err (!%p116_p4)
}
 0x214   :  { %s120_s25 = scalar_lea.hbm %s187_s4, 128 }
 0x215   :  { %p121_p5 = scmp.ne.s32.totalorder %s187_s4, %s120_s25  ;;  %p124_p6 = scmp.lt.u32.totalorder %s120_s25, %s187_s4 }
 0x217   :  { %p126_p7 = pnand %p124_p6, %p121_p5 }
 0x219   :  { %129 = shalt.err (!%p126_p7)
}
 0x21a   :  { %94 = dma.vmem_to_hbm [thread:$0]  %s92_s3, 128, %s187_s4, [#allocation3]  }
 0x21b   :  { %130 = dma.done.wait [#allocation3], 128  }
 0x21c   :  { %131 = vsyncadd [#allocation3], 4294967168 }
 0x21d   :  { %98 = vsyncpa [#allocation3], 1 }

</bundles_post_ra>
